<compile_context>
chip_gen: v5e
topology: v5e:2x2
jax: 0.10.0
libtpu: 0.0.40
codegen_flags: <defaults>
</compile_context>

<pallas_src>
import functools

import jax
import jax.numpy as jnp
from jax.experimental import pallas as pl
from jax.experimental.pallas import tpu as pltpu


def _fused_mlp_kernel(x_ref, w1_ref, b1_ref, wh_ref, bh_ref,
                      w2_ref, b2_ref, w3_ref, b3_ref, o_ref,
                      *, num_hidden_layers):
    """Entire CriticNet forward for one batch tile; activations never leave vregs."""
    x = x_ref[...].astype(jnp.float32)

    # first_layer: Linear -> (Dropout = identity) -> ReLU
    h = jnp.maximum(
        jnp.dot(x, w1_ref[...], preferred_element_type=jnp.float32) + b1_ref[...],
        0.0)

    # hidden_layer: SAME weights applied (num_hidden_layers - 1) times.
    # Load weights/bias once (hoisted) and statically unroll the tiny loop.
    wh = wh_ref[...]
    bh = bh_ref[...]
    for _ in range(num_hidden_layers - 1):
        h = jnp.maximum(
            jnp.dot(h, wh, preferred_element_type=jnp.float32) + bh, 0.0)

    # last_before_layer
    h = jnp.maximum(
        jnp.dot(h, w2_ref[...], preferred_element_type=jnp.float32) + b2_ref[...],
        0.0)

    # last_layer (no ReLU). Output lane dim is padded to a multiple of 128 in the
    # wrapper, so this store is lane-dense.
    y = jnp.dot(h, w3_ref[...], preferred_element_type=jnp.float32) + b3_ref[...]
    o_ref[...] = y.astype(o_ref.dtype)


def critic_net_forward(params, x, num_hidden_layers, *, block_batch=128):
    """Mirrors CriticNet.forward, fused into a single Pallas call."""
    w1, b1 = params["first"]
    wh, bh = params["hidden"]
    w2, b2 = params["last_before"]
    w3, b3 = params["last"]

    batch, in_dim = x.shape
    hidden = w1.shape[1]
    hidden2 = w2.shape[1]
    outputs = w3.shape[1]

    # Lane-dense final store: pad out_dim up to a multiple of 128 with zero weights.
    out_pad = ((outputs + 127) // 128) * 128
    w3p = jnp.pad(w3, ((0, 0), (0, out_pad - outputs)))
    b3p = jnp.pad(b3, ((0, 0), (0, out_pad - outputs)))

    kernel = functools.partial(_fused_mlp_kernel,
                               num_hidden_layers=num_hidden_layers)
    args = (x, w1, b1, wh, bh, w2, b2, w3p, b3p)

    if batch > block_batch and batch % block_batch == 0:
        # Batch-parallel grid: weights replicated per tile (index 0), rows split
        # across grid steps -> megacore sharding on v7x, pipelining everywhere.
        nb = batch // block_batch
        y = pl.pallas_call(
            kernel,
            out_shape=jax.ShapeDtypeStruct((batch, out_pad), x.dtype),
            grid=(nb,),
            in_specs=[
                pl.BlockSpec((block_batch, in_dim), lambda i: (i, 0)),
                pl.BlockSpec((in_dim, hidden), lambda i: (0, 0)),
                pl.BlockSpec((1, hidden), lambda i: (0, 0)),
                pl.BlockSpec((hidden, hidden), lambda i: (0, 0)),
                pl.BlockSpec((1, hidden), lambda i: (0, 0)),
                pl.BlockSpec((hidden, hidden2), lambda i: (0, 0)),
                pl.BlockSpec((1, hidden2), lambda i: (0, 0)),
                pl.BlockSpec((hidden2, out_pad), lambda i: (0, 0)),
                pl.BlockSpec((1, out_pad), lambda i: (0, 0)),
            ],
            out_specs=pl.BlockSpec((block_batch, out_pad), lambda i: (i, 0)),
            compiler_params=pltpu.CompilerParams(
                dimension_semantics=("parallel",)),
        )(*args)
    else:
        # Small batch: everything fits in VMEM whole; no grid, no pipeline overhead.
        y = pl.pallas_call(
            kernel,
            out_shape=jax.ShapeDtypeStruct((batch, out_pad), x.dtype),
        )(*args)

    return y[:, :outputs]


def _init_linear(key, in_dim, out_dim, dtype=jnp.float32):
    """Deterministic PyTorch-style init: U(-1/sqrt(in), 1/sqrt(in)).

    Weights stored as (in_features, out_features) = transpose of PyTorch layout,
    so the kernel computes y = x @ W + b directly on the MXU.
    """
    kw, kb = jax.random.split(key)
    bound = 1.0 / jnp.sqrt(jnp.asarray(in_dim, dtype))
    w = jax.random.uniform(kw, (in_dim, out_dim), dtype, -bound, bound)
    b = jax.random.uniform(kb, (1, out_dim), dtype, -bound, bound)
    return w, b


def make_critic_params(key, inputs, outputs, hidden_dim=None):
    if hidden_dim is None:
        hidden_dim = inputs * 4
    k0, k1, k2, k3 = jax.random.split(key, 4)
    return {
        "first": _init_linear(k0, inputs, hidden_dim),
        "hidden": _init_linear(k1, hidden_dim, hidden_dim),   # shared across repeats
        "last_before": _init_linear(k2, hidden_dim, hidden_dim // 2),
        "last": _init_linear(k3, hidden_dim // 2, outputs),
    }


if __name__ == "__main__":
    # Small, forward-consistent shapes.
    inputs = 16          # state dimension
    outputs = 1          # critic value
    num_hidden_layers = 3
    hidden_dim = None    # -> inputs * 4 = 64
    batch = 8

    key = jax.random.PRNGKey(0)
    k_params, k_x, k_xbig = jax.random.split(key, 3)

    params = make_critic_params(k_params, inputs, outputs, hidden_dim)
    x = jax.random.normal(k_x, (batch, inputs), jnp.float32)

    fwd = jax.jit(functools.partial(critic_net_forward,
                                    num_hidden_layers=num_hidden_layers))

    # Pure-JAX reference (same math, dropout = identity in eval).
    def ref(params, x):
        w, b = params["first"]; x = jnp.maximum(x @ w + b, 0.0)
        w, b = params["hidden"]
        for _ in range(num_hidden_layers - 1):
            x = jnp.maximum(x @ w + b, 0.0)
        w, b = params["last_before"]; x = jnp.maximum(x @ w + b, 0.0)
        w, b = params["last"]
        return x @ w + b

    # Path 1: small batch -> single-block fused kernel (no grid).
    out = fwd(params, x)
    jax.block_until_ready(out)
    assert out.shape == (batch, outputs), out.shape
    assert out.dtype == jnp.float32
    assert jnp.allclose(out, ref(params, x), atol=1e-5, rtol=1e-5)

    # Path 2: larger batch -> batch-parallel grid (exercises megacore sharding path).
    x_big = jax.random.normal(k_xbig, (256, inputs), jnp.float32)
    out_big = fwd(params, x_big)
    jax.block_until_ready(out_big)
    assert out_big.shape == (256, outputs), out_big.shape
    assert jnp.allclose(out_big, ref(params, x_big), atol=1e-5, rtol=1e-5)

    print("KERNEL_OK")
</pallas_src>

<mosaic_0001>
module attributes {stable_mosaic.version = 11 : i64} {
  func.func @_fused_mlp_kernel(%arg0: memref<8x16xf32, #tpu.memory_space<vmem>>, %arg1: memref<16x64xf32, #tpu.memory_space<vmem>>, %arg2: memref<1x64xf32, #tpu.memory_space<vmem>>, %arg3: memref<64x64xf32, #tpu.memory_space<vmem>>, %arg4: memref<1x64xf32, #tpu.memory_space<vmem>>, %arg5: memref<64x32xf32, #tpu.memory_space<vmem>>, %arg6: memref<1x32xf32, #tpu.memory_space<vmem>>, %arg7: memref<32x128xf32, #tpu.memory_space<vmem>>, %arg8: memref<1x128xf32, #tpu.memory_space<vmem>>, %arg9: memref<8x128xf32, #tpu.memory_space<vmem>>) attributes {dimension_semantics = [], scalar_prefetch = 0 : i64, scratch_operands = 0 : i64, tpu.core_type = #tpu.core_type<tc>} {
    %c0 = arith.constant 0 : index
    %c0_0 = arith.constant 0 : index
    %0 = vector.load %arg0[%c0, %c0_0] : memref<8x16xf32, #tpu.memory_space<vmem>>, vector<8x16xf32>
    %c0_1 = arith.constant 0 : index
    %c0_2 = arith.constant 0 : index
    %1 = vector.load %arg1[%c0_1, %c0_2] : memref<16x64xf32, #tpu.memory_space<vmem>>, vector<16x64xf32>
    %cst = arith.constant dense<0.000000e+00> : vector<8x64xf32>
    %2 = tpu.matmul %0, %1, %cst {dimension_numbers = #tpu.dot_dimension_numbers<[1], [0], [0], [1], [0, 0, 1, 1], [], []>} : vector<8x16xf32>, vector<16x64xf32>, vector<8x64xf32> -> vector<8x64xf32>
    %c0_3 = arith.constant 0 : index
    %c0_4 = arith.constant 0 : index
    %3 = vector.load %arg2[%c0_3, %c0_4] : memref<1x64xf32, #tpu.memory_space<vmem>>, vector<1x64xf32>
    %4 = vector.broadcast %3 : vector<1x64xf32> to vector<8x64xf32>
    %5 = arith.addf %2, %4 : vector<8x64xf32>
    %cst_5 = arith.constant 0.000000e+00 : f32
    %6 = vector.broadcast %cst_5 : f32 to vector<8x64xf32>
    %7 = arith.maximumf %5, %6 : vector<8x64xf32>
    %c0_6 = arith.constant 0 : index
    %c0_7 = arith.constant 0 : index
    %8 = vector.load %arg3[%c0_6, %c0_7] : memref<64x64xf32, #tpu.memory_space<vmem>>, vector<64x64xf32>
    %c0_8 = arith.constant 0 : index
    %c0_9 = arith.constant 0 : index
    %9 = vector.load %arg4[%c0_8, %c0_9] : memref<1x64xf32, #tpu.memory_space<vmem>>, vector<1x64xf32>
    %cst_10 = arith.constant dense<0.000000e+00> : vector<8x64xf32>
    %10 = tpu.matmul %7, %8, %cst_10 {dimension_numbers = #tpu.dot_dimension_numbers<[1], [0], [0], [1], [0, 0, 1, 1], [], []>} : vector<8x64xf32>, vector<64x64xf32>, vector<8x64xf32> -> vector<8x64xf32>
    %11 = vector.broadcast %9 : vector<1x64xf32> to vector<8x64xf32>
    %12 = arith.addf %10, %11 : vector<8x64xf32>
    %cst_11 = arith.constant 0.000000e+00 : f32
    %13 = vector.broadcast %cst_11 : f32 to vector<8x64xf32>
    %14 = arith.maximumf %12, %13 : vector<8x64xf32>
    %cst_12 = arith.constant dense<0.000000e+00> : vector<8x64xf32>
    %15 = tpu.matmul %14, %8, %cst_12 {dimension_numbers = #tpu.dot_dimension_numbers<[1], [0], [0], [1], [0, 0, 1, 1], [], []>} : vector<8x64xf32>, vector<64x64xf32>, vector<8x64xf32> -> vector<8x64xf32>
    %16 = vector.broadcast %9 : vector<1x64xf32> to vector<8x64xf32>
    %17 = arith.addf %15, %16 : vector<8x64xf32>
    %cst_13 = arith.constant 0.000000e+00 : f32
    %18 = vector.broadcast %cst_13 : f32 to vector<8x64xf32>
    %19 = arith.maximumf %17, %18 : vector<8x64xf32>
    %c0_14 = arith.constant 0 : index
    %c0_15 = arith.constant 0 : index
    %20 = vector.load %arg5[%c0_14, %c0_15] : memref<64x32xf32, #tpu.memory_space<vmem>>, vector<64x32xf32>
    %cst_16 = arith.constant dense<0.000000e+00> : vector<8x32xf32>
    %21 = tpu.matmul %19, %20, %cst_16 {dimension_numbers = #tpu.dot_dimension_numbers<[1], [0], [0], [1], [0, 0, 1, 1], [], []>} : vector<8x64xf32>, vector<64x32xf32>, vector<8x32xf32> -> vector<8x32xf32>
    %c0_17 = arith.constant 0 : index
    %c0_18 = arith.constant 0 : index
    %22 = vector.load %arg6[%c0_17, %c0_18] : memref<1x32xf32, #tpu.memory_space<vmem>>, vector<1x32xf32>
    %23 = vector.broadcast %22 : vector<1x32xf32> to vector<8x32xf32>
    %24 = arith.addf %21, %23 : vector<8x32xf32>
    %cst_19 = arith.constant 0.000000e+00 : f32
    %25 = vector.broadcast %cst_19 : f32 to vector<8x32xf32>
    %26 = arith.maximumf %24, %25 : vector<8x32xf32>
    %c0_20 = arith.constant 0 : index
    %c0_21 = arith.constant 0 : index
    %27 = vector.load %arg7[%c0_20, %c0_21] : memref<32x128xf32, #tpu.memory_space<vmem>>, vector<32x128xf32>
    %cst_22 = arith.constant dense<0.000000e+00> : vector<8x128xf32>
    %28 = tpu.matmul %26, %27, %cst_22 {dimension_numbers = #tpu.dot_dimension_numbers<[1], [0], [0], [1], [0, 0, 1, 1], [], []>} : vector<8x32xf32>, vector<32x128xf32>, vector<8x128xf32> -> vector<8x128xf32>
    %c0_23 = arith.constant 0 : index
    %c0_24 = arith.constant 0 : index
    %29 = vector.load %arg8[%c0_23, %c0_24] : memref<1x128xf32, #tpu.memory_space<vmem>>, vector<1x128xf32>
    %30 = vector.broadcast %29 : vector<1x128xf32> to vector<8x128xf32>
    %31 = arith.addf %28, %30 : vector<8x128xf32>
    %c0_25 = arith.constant 0 : index
    %c0_26 = arith.constant 0 : index
    %32 = vector.load %arg9[%c0_25, %c0_26] : memref<8x128xf32, #tpu.memory_space<vmem>>, vector<8x128xf32>
    tpu.vector_store %arg9[%c0_25, %c0_26], %31 {strides = array<i32>} : memref<8x128xf32, #tpu.memory_space<vmem>>, vector<8x128xf32>,
    return
  }
}

</mosaic_0001>

<bundles_post_ra>
// kernel: critic_net_forward.1
= control target key start
LH: loop header
LB: loop body
LE: loop exit
PB: predicated region body
PF: predicated region fallthrough
CT: control target
= control target key end

     0   :  { %vm39_vm0 = vcmask 130048   ;;  %vm76_vm1 = vcmask 523264   ;;  %vm169_vm2 = vcmask 261120   ;;  %s344_s1 = inlined_call_operand.vmem [shape: f32[16,64], index: 1, kind: input, shape index: {}]   ;;  %s345_s0 = inlined_call_operand.vmem [shape: f32[8,16], index: 0, kind: input, shape index: {}]   ;;  %s346_s3 = inlined_call_operand.vmem [shape: f32[64,64], index: 3, kind: input, shape index: {}]   ;;  %s347_s2 = inlined_call_operand.vmem [shape: f32[1,64], index: 2, kind: input, shape index: {}]   ;;  %s348_s4 = inlined_call_operand.vmem [shape: f32[1,64], index: 4, kind: input, shape index: {}]   ;;  %s349_s5 = inlined_call_operand.vmem [shape: f32[64,32], index: 5, kind: input, shape index: {}]   ;;  %s350_s6 = inlined_call_operand.vmem [shape: f32[1,32], index: 6, kind: input, shape index: {}]   ;;  %s351_s7 = inlined_call_operand.vmem [shape: f32[32,128], index: 7, kind: input, shape index: {}]   ;;  %s352_s8 = inlined_call_operand.vmem [shape: f32[1,128], index: 8, kind: input, shape index: {}]   ;;  %s353_s9 = inlined_call_operand.vmem [shape: f32[8,128], index: 9, kind: output, shape index: {}]  }
   0x1   :  { %v34_v0 = vld [vmem:[%s344_s1 + $0x8] sm:$0xff]  ;;  %v33_v1 = vld [vmem:[%s344_s1] sm:$0xff]  ;;  %v71_v3 = vld [vmem:[%s346_s3 + $0x38] sm:$0xff] }
   0x2   :  { %57 = vmatpush.msra.mxu0 %v34_v0  ;;  %v32_v2 = vld [vmem:[%s345_s0] sm:$0xff]  ;;  %v70_v4 = vld [vmem:[%s346_s3 + $0x30] sm:$0xff]  ;;  %88 = vmatpush.msra.mxu1 %v71_v3  ;;  %v69_v5 = vld [vmem:[%s346_s3 + $0x28] sm:$0xff] }
   0x3   :  { %112 = vmatpush.msra.mxu2 %v71_v3  ;;  %v68_v6 = vld [vmem:[%s346_s3 + $0x20] sm:$0xff]  ;;  %v67_v7 = vld [vmem:[%s346_s3 + $0x18] sm:$0xff]  ;;  %v66_v8 = vld [vmem:[%s346_s3 + $0x10] sm:$0xff] }
   0x4   :  { %58 = vmatpush.msra.mxu0 %v33_v1  ;;  %89 = vmatpush.msra.mxu1 %v70_v4  ;;  %v65_v9 = vld [vmem:[%s346_s3 + $0x8] sm:$0xff]  ;;  %v64_v10 = vld [vmem:[%s346_s3] sm:$0xff]  ;;  %v132_v15 = vld [vmem:[%s349_s5 + $0x38] sm:$0xff] }
   0x5   :  { %198 = vmatmul.msk.f32.vlgmr.msra.gmra.mxu0 %vm39_vm0, %v32_v2  ;;  %113 = vmatpush.msra.mxu2 %v70_v4  ;;  %v203_v11 = vld [vmem:[%s347_s2] ss:$0 sm:$0xff]  ;;  %v131_v16 = vld [vmem:[%s349_s5 + $0x30] sm:$0xff]  ;;  %v130_v17 = vld [vmem:[%s349_s5 + $0x28] sm:$0xff] }
   0x6   :  { %90 = vmatpush.msra.mxu1 %v69_v5  ;;  %148 = vmatpush.msra.mxu3 %v132_v15  ;;  %v129_v18 = vld [vmem:[%s349_s5 + $0x20] sm:$0xff]  ;;  %v128_v19 = vld [vmem:[%s349_s5 + $0x18] sm:$0xff]  ;;  %v127_v24 = vld [vmem:[%s349_s5 + $0x10] sm:$0xff] }
   0x7   :  { %114 = vmatpush.msra.mxu2 %v69_v5  ;;  %v204_v20 = vld [vmem:[%s348_s4] ss:$0 sm:$0xff]  ;;  %v126_v25 = vld [vmem:[%s349_s5 + $0x8] sm:$0xff]  ;;  %v164_v27 = vld [vmem:[%s351_s7 + $0x18] sm:$0xff] }
   0x8   :  { %91 = vmatpush.msra.mxu1 %v68_v6  ;;  %149 = vmatpush.msra.mxu3 %v131_v16  ;;  %v125_v26 = vld [vmem:[%s349_s5] sm:$0xff]  ;;  %v163_v28 = vld [vmem:[%s351_s7 + $0x10] sm:$0xff]  ;;  %v162_v32 = vld [vmem:[%s351_s7 + $0x8] sm:$0xff] }
   0x9   :  { %115 = vmatpush.msra.mxu2 %v68_v6  ;;  %185 = vmatpush.msrb.mxu0 %v164_v27  ;;  %v161_v33 = vld [vmem:[%s351_s7] sm:$0xff] }
   0xa   :  { %92 = vmatpush.msra.mxu1 %v67_v7  ;;  %150 = vmatpush.msra.mxu3 %v130_v17  ;;  %v205_v34 = vld [vmem:[%s350_s6] ss:$0 sm:$0xff] }
   0xb   :  { %116 = vmatpush.msra.mxu2 %v67_v7  ;;  %186 = vmatpush.msrb.mxu0 %v163_v28  ;;  %v206_v38 = vld [vmem:[%s352_s8] ss:$0 sm:$0xff] }
   0xc   :  { %93 = vmatpush.msra.mxu1 %v66_v8  ;;  %151 = vmatpush.msra.mxu3 %v129_v18 }
   0xd   :  { %117 = vmatpush.msra.mxu2 %v66_v8  ;;  %187 = vmatpush.msrb.mxu0 %v162_v32 }
   0xe   :  { %94 = vmatpush.msra.mxu1 %v65_v9  ;;  %152 = vmatpush.msra.mxu3 %v128_v19 }
   0xf   :  { %118 = vmatpush.msra.mxu2 %v65_v9  ;;  %188 = vmatpush.msrb.mxu0 %v161_v33 }
  0x10   :  { %95 = vmatpush.msra.mxu1 %v64_v10  ;;  %153 = vmatpush.msra.mxu3 %v127_v24 }
  0x11   :  { %119 = vmatpush.msra.mxu2 %v64_v10 }
  0x12   :  { %154 = vmatpush.msra.mxu3 %v126_v25 }
  0x14   :  { %155 = vmatpush.msra.mxu3 %v125_v26 }
  0x82   :  { %v60_v12 = vpop.f32.mrf.mxu0 }
  0x83   :  { %v61_v13 = vadd.f32 %v203_v11, %v60_v12 }
  0x85   :  { %v63_v14 = vmax.f32 %v61_v13, 0.0 }
  0x87   :  { %199 = vmatmul.msk.f32.vlgmr.msra.gmra.mxu1 %vm76_vm1, %v63_v14 }
 0x104   :  { %v97_v21 = vpop.f32.mrf.mxu1 }
 0x105   :  { %v98_v22 = vadd.f32 %v204_v20, %v97_v21 }
 0x107   :  { %v100_v23 = vmax.f32 %v98_v22, 0.0 }
 0x109   :  { %200 = vmatmul.msk.f32.vlgmr.msra.gmra.mxu2 %vm76_vm1, %v100_v23 }
 0x18c   :  { %v121_v29 = vpop.f32.mrf.mxu2 }
 0x18d   :  { %v122_v30 = vadd.f32 %v204_v20, %v121_v29 }
 0x18f   :  { %v124_v31 = vmax.f32 %v122_v30, 0.0 }
 0x191   :  { %201 = vmatmul.msk.f32.vlgmr.msra.gmra.mxu3 %vm76_vm1, %v124_v31 }
 0x214   :  { %v157_v35 = vpop.f32.mrf.mxu3 }
 0x215   :  { %v158_v36 = vadd.f32 %v205_v34, %v157_v35 }
 0x217   :  { %v160_v37 = vmax.f32 %v158_v36, 0.0 }
 0x219   :  { %202 = vmatmul.msk.f32.vlgmr.msrb.gmra.mxu0 %vm169_vm2, %v160_v37 }
 0x296   :  { %v190_v39 = vpop.f32.mrf.mxu0 }
 0x297   :  { %v191_v40 = vadd.f32 %v206_v38, %v190_v39 }
 0x299   :  { %193 = vst [vmem:[%s353_s9] sm:$0xff] %v191_v40 }

</bundles_post_ra>
